<compile_context>
chip_gen: v7x
topology: tpu7x:2x2x1
jax: 0.10.0
libtpu: 0.0.40
codegen_flags: <defaults>
</compile_context>

<pallas_src>
import functools

import jax
import jax.numpy as jnp
from jax.experimental import pallas as pl
from jax.experimental.pallas import tpu as pltpu


LANES = 1024                       # lane width of the flattened slab (mult of 128)
LOGIT_CLAMP = 6.906754778648554    # log(0.999/0.001): sigmoid(x) clamp in logit space


def _round_down(a, b):
    return (a // b) * b


def _chip_config():
    """Per-generation tuning: (#TC slices, dimension_semantics, max block rows,
    VMEM limit bytes). Conservative defaults if detection fails."""
    kind = ""
    try:
        kind = jax.devices()[0].device_kind.lower()
    except Exception:
        pass
    vmem = 0
    try:
        vmem = int(getattr(pltpu.get_tpu_info(), "vmem_capacity_bytes", 0))
    except Exception:
        vmem = 0

    is_v7 = "v7" in kind
    single_tc = any(t in kind for t in ("lite", "v5e", "v6e"))
    two_tc = (is_v7 or ("v4" in kind) or ("v5p" in kind)) and not single_tc
    num_parallel = 2 if two_tc else 1

    if num_parallel == 2 and is_v7 and hasattr(pltpu, "CORE_PARALLEL"):
        # Make the 2-TC split actually shard on v7x.
        dim_sem = (pltpu.CORE_PARALLEL, pltpu.ARBITRARY)
    elif num_parallel == 2:
        dim_sem = ("parallel", "arbitrary")
    else:
        dim_sem = ("arbitrary", "arbitrary")

    if vmem >= (100 << 20):
        # 128 MiB VMEM chips (v5e/v6e): 4 MiB f32 blocks halve per-step overhead.
        max_rows, vmem_limit = 1024, 64 << 20
    else:
        # Safe everywhere, incl. v7x (64 MiB per-TC VMEM) and unknown chips.
        max_rows, vmem_limit = 512, 40 << 20
    return num_parallel, dim_sem, max_rows, vmem_limit


_NUM_PARALLEL, _DIM_SEMANTICS, _MAX_BLOCK_ROWS, _VMEM_LIMIT = _chip_config()


@functools.partial(jax.jit, static_argnames=("scale",))
def cpn_loss(outputs, label, mask, *, scale):
    """JAX/Pallas equivalent of CPNLoss.forward.

    outputs, label, mask: arrays of identical shape (e.g. NCHW).  label/mask may
    be narrow dtypes (bf16/int8/bool); they are widened in-register.
    Returns dict with 'pos_loss', 'neg_loss', 'total_loss' (f32 scalars).
    """
    n = outputs.size
    n_main = _round_down(n, LANES)
    rows_raw = n_main // LANES

    x_flat = jnp.ravel(outputs)
    y_flat = jnp.ravel(label)
    m_flat = jnp.ravel(mask)

    # sums = [sum(mask), sum(y*mask), sum(loss_map), sum(loss_map*y)]
    sums = jnp.zeros((4,), jnp.float32)

    if rows_raw > 0:
        # Tiny inputs (< 8 rows) get a negligible (<28 KiB/array) zero pad so the
        # sublane fold stays a multiple of 8; large inputs are never padded.
        rows = max(rows_raw, 8)
        br = min(_MAX_BLOCK_ROWS, _round_down(rows, 8))     # multiple of 8
        nb = pl.cdiv(rows, br)                               # total row blocks
        nbh = pl.cdiv(nb, _NUM_PARALLEL)                     # blocks per TC slice
        # Masking needed iff the grid over-covers `rows` (ragged edge block
        # and/or a duplicated clamped block on the second core slice).
        need_mask = (_NUM_PARALLEL * nbh * br) != rows

        def prep(flat):
            slab = flat[:n_main].reshape(rows_raw, LANES)    # dtype preserved
            if rows != rows_raw:
                slab = jnp.pad(slab, ((0, rows - rows_raw), (0, 0)))
            return slab

        # TODO(synk): when n % 1024 != 0 the prefix slice may still copy the main
        # part before the custom call; unavoidable without an in-kernel flat-index
        # mask on a non-reshapeable buffer.
        x2, y2, m2 = prep(x_flat), prep(y_flat), prep(m_flat)

        def in_index(c, i):
            # Clamp so the (possible) extra step on the second core slice maps to
            # a valid block; its contribution is zeroed by the in-kernel row mask.
            return (jnp.minimum(c * nbh + i, nb - 1), 0)

        def kernel(x_ref, y_ref, m_ref, o_ref):
            c = pl.program_id(0)
            i = pl.program_id(1)

            @pl.when(i == 0)
            def _init():
                o_ref[...] = jnp.zeros_like(o_ref)

            def load():
                return (x_ref[...].astype(jnp.float32),
                        y_ref[...].astype(jnp.float32),
                        m_ref[...].astype(jnp.float32))

            # TODO(synk): strip-mining the block body (fori_loop over 64-row
            # strips) would bound temporaries further; verify with a bundle dump
            # before committing (review item).
            def accumulate(x, y, m):
                # Clamping logits to +-log(999) == sigmoid(x).clamp(0.001, 0.999).
                xc = jnp.clip(x, -LOGIT_CLAMP, LOGIT_CLAMP)
                # Softplus identity: exp(xc) <= 999, no overflow possible.
                loss_map = (jnp.log1p(jnp.exp(xc)) - xc * y) * m

                def fold(t):
                    # (br, L) -> (8, L): layout-preserving reshape + major-axis
                    # sum == pure vreg-wise VPU adds (no cross-lane XLU per step).
                    return jnp.sum(t.reshape(br // 8, 8, LANES), axis=0)

                o_ref[0, 0] += fold(m)             # sum(mask)
                o_ref[0, 1] += fold(y * m)         # sum(y * mask)     (num_pos)
                o_ref[0, 2] += fold(loss_map)      # sum(loss_map)
                o_ref[0, 3] += fold(loss_map * y)  # sum(loss_map * y)

            if need_mask:
                row0 = (c * nbh + i) * br          # intended (unclamped) first row
                is_full = row0 + br <= rows

                @pl.when(is_full)
                def _fast():                        # interior block: no selects
                    accumulate(*load())

                @pl.when(jnp.logical_not(is_full))
                def _edge():                        # ragged edge / duplicate block
                    x, y, m = load()
                    rid = row0 + jax.lax.broadcasted_iota(jnp.int32, (br, 1), 0)
                    valid = rid < rows
                    # select (not multiply) so garbage NaN/Inf cannot leak.
                    accumulate(jnp.where(valid, x, 0.0),
                               jnp.where(valid, y, 0.0),
                               jnp.where(valid, m, 0.0))
            else:
                accumulate(*load())

        slab_elems = rows * LANES
        in_bytes = slab_elems * (x2.dtype.itemsize + y2.dtype.itemsize
                                 + m2.dtype.itemsize)
        out_bytes = _NUM_PARALLEL * 4 * 8 * LANES * 4
        cost = pl.CostEstimate(flops=14 * slab_elems,
                               transcendentals=2 * slab_elems,
                               bytes_accessed=in_bytes + out_bytes)

        partials = pl.pallas_call(
            kernel,
            out_shape=jax.ShapeDtypeStruct((_NUM_PARALLEL, 4, 8, LANES),
                                           jnp.float32),
            grid_spec=pltpu.PrefetchScalarGridSpec(
                num_scalar_prefetch=0,
                grid=(_NUM_PARALLEL, nbh),
                in_specs=[
                    pl.BlockSpec((br, LANES), in_index),
                    pl.BlockSpec((br, LANES), in_index),
                    pl.BlockSpec((br, LANES), in_index),
                ],
                out_specs=pl.BlockSpec((1, 4, 8, LANES),
                                       lambda c, i: (c, 0, 0, 0)),
            ),
            compiler_params=pltpu.CompilerParams(
                dimension_semantics=_DIM_SEMANTICS,
                vmem_limit_bytes=_VMEM_LIMIT,
            ),
            cost_estimate=cost,
        )(x2, y2, m2)

        sums = sums + jnp.sum(partials, axis=(0, 2, 3))

    if n_main != n:
        # Sub-1024-element tail: tiny pure-JAX correction term instead of padding
        # (and re-reading/writing) all three full arrays.
        xt = x_flat[n_main:].astype(jnp.float32)
        yt = y_flat[n_main:].astype(jnp.float32)
        mt = m_flat[n_main:].astype(jnp.float32)
        xc = jnp.clip(xt, -LOGIT_CLAMP, LOGIT_CLAMP)
        lm = (jnp.log1p(jnp.exp(xc)) - xc * yt) * mt
        sums = sums + jnp.stack(
            [jnp.sum(mt), jnp.sum(yt * mt), jnp.sum(lm), jnp.sum(lm * yt)])

    num_sample = sums[0]
    num_pos = sums[1]
    num_neg = num_sample - num_pos
    sum_loss = sums[2]
    sum_loss_pos = sums[3]
    # NOTE: like the PyTorch module, no guard against num_pos/num_neg == 0.
    pos = sum_loss_pos / num_pos
    neg = (sum_loss - sum_loss_pos) / num_neg
    total = scale * pos + (1.0 - scale) * neg
    return {"pos_loss": pos, "neg_loss": neg, "total_loss": total}


def _reference(outputs, label, mask, scale):
    """Pure-JAX reference mirroring the PyTorch forward pass."""
    y = label.astype(jnp.float32)
    m = mask.astype(jnp.float32)
    x = outputs.astype(jnp.float32)
    num_sample = jnp.sum(m)
    num_pos = jnp.sum(y * m)
    num_neg = num_sample - num_pos
    preds = jnp.clip(jax.nn.sigmoid(x), 0.001, 0.999)
    loss_map = -(y * jnp.log(preds) + (1.0 - y) * jnp.log(1.0 - preds)) * m
    pos = jnp.sum(loss_map * y) / num_pos
    neg = jnp.sum(loss_map * (1.0 - y)) / num_neg
    return {
        "pos_loss": pos,
        "neg_loss": neg,
        "total_loss": scale * pos + (1.0 - scale) * neg,
    }


if __name__ == "__main__":
    # Deterministic "hyperparameter" (module's h['scale']).
    SCALE = 0.7

    key = jax.random.PRNGKey(0)
    k1, k2, k3 = jax.random.split(key, 3)

    # Small NCHW shapes consistent with a dense-prediction head.
    B, C, H, W = 2, 4, 16, 16
    outputs = jax.random.normal(k1, (B, C, H, W), dtype=jnp.float32)
    label = (jax.random.uniform(k2, (B, C, H, W)) > 0.5).astype(jnp.float32)
    mask = (jax.random.uniform(k3, (B, C, H, W)) > 0.25).astype(jnp.float32)

    result = cpn_loss(outputs, label, mask, scale=SCALE)
    jax.block_until_ready(result)

    ref = _reference(outputs, label, mask, SCALE)
    for k in ("pos_loss", "neg_loss", "total_loss"):
        assert jnp.allclose(result[k], ref[k], rtol=1e-4, atol=1e-6), (
            k, result[k], ref[k])

    print("KERNEL_OK")
</pallas_src>

<mosaic_0001>
module attributes {stable_mosaic.version = 11 : i64} {
  func.func @kernel(%arg0: i32, %arg1: i32, %arg2: memref<8x1024xf32, #tpu.memory_space<vmem>>, %arg3: memref<8x1024xf32, #tpu.memory_space<vmem>>, %arg4: memref<8x1024xf32, #tpu.memory_space<vmem>>, %arg5: memref<1x4x8x1024xf32, #tpu.memory_space<vmem>>) attributes {dimension_semantics = [#tpu.dimension_semantics<arbitrary>, #tpu.dimension_semantics<arbitrary>], iteration_bounds = array<i64: 1, 1>, scalar_prefetch = 0 : i64, scratch_operands = 0 : i64, tpu.core_type = #tpu.core_type<tc>, window_params = [{transform_indices = @transform_0, window_bounds = array<i64: 8, 1024>}, {transform_indices = @transform_1, window_bounds = array<i64: 8, 1024>}, {transform_indices = @transform_2, window_bounds = array<i64: 8, 1024>}, {transform_indices = @transform_3, window_bounds = array<i64: 1, 4, 8, 1024>}]} {
    %c0_i32 = arith.constant 0 : i32
    %0 = arith.cmpi eq, %arg1, %c0_i32 : i32
    %1 = arith.extui %0 : i1 to i32
    %c0_i32_0 = arith.constant 0 : i32
    %2 = arith.cmpi ne, %1, %c0_i32_0 : i32
    scf.if %2 {
      %cst_40 = arith.constant 0.000000e+00 : f32
      %49 = vector.broadcast %cst_40 : f32 to vector<1x4x8x1024xf32>
      %c0_41 = arith.constant 0 : index
      %c0_42 = arith.constant 0 : index
      %c0_43 = arith.constant 0 : index
      %c0_44 = arith.constant 0 : index
      %50 = vector.load %arg5[%c0_41, %c0_42, %c0_43, %c0_44] : memref<1x4x8x1024xf32, #tpu.memory_space<vmem>>, vector<1x4x8x1024xf32>
      tpu.vector_store %arg5[%c0_41, %c0_42, %c0_43, %c0_44], %49 {strides = array<i32>} : memref<1x4x8x1024xf32, #tpu.memory_space<vmem>>, vector<1x4x8x1024xf32>,
    } else {
    }
    %c0 = arith.constant 0 : index
    %c0_1 = arith.constant 0 : index
    %3 = vector.load %arg2[%c0, %c0_1] : memref<8x1024xf32, #tpu.memory_space<vmem>>, vector<8x1024xf32>
    %c0_2 = arith.constant 0 : index
    %c0_3 = arith.constant 0 : index
    %4 = vector.load %arg3[%c0_2, %c0_3] : memref<8x1024xf32, #tpu.memory_space<vmem>>, vector<8x1024xf32>
    %c0_4 = arith.constant 0 : index
    %c0_5 = arith.constant 0 : index
    %5 = vector.load %arg4[%c0_4, %c0_5] : memref<8x1024xf32, #tpu.memory_space<vmem>>, vector<8x1024xf32>
    %cst = arith.constant -6.90675497 : f32
    %cst_6 = arith.constant 6.90675497 : f32
    %6 = vector.broadcast %cst : f32 to vector<8x1024xf32>
    %7 = arith.maximumf %6, %3 : vector<8x1024xf32>
    %8 = vector.broadcast %cst_6 : f32 to vector<8x1024xf32>
    %9 = arith.minimumf %8, %7 : vector<8x1024xf32>
    %10 = math.exp %9 : vector<8x1024xf32>
    %11 = math.log1p %10 : vector<8x1024xf32>
    %12 = arith.mulf %9, %4 : vector<8x1024xf32>
    %13 = arith.subf %11, %12 : vector<8x1024xf32>
    %14 = arith.mulf %13, %5 : vector<8x1024xf32>
    %c0_7 = arith.constant 0 : index
    %c0_8 = arith.constant 0 : index
    %c0_9 = arith.constant 0 : index
    %c0_10 = arith.constant 0 : index
    %15 = vector.load %arg5[%c0_7, %c0_8, %c0_9, %c0_10] : memref<1x4x8x1024xf32, #tpu.memory_space<vmem>>, vector<1x1x8x1024xf32>
    %16 = vector.shape_cast %15 : vector<1x1x8x1024xf32> to vector<8x1024xf32>
    %17 = vector.shape_cast %5 : vector<8x1024xf32> to vector<1x8x1024xf32>
    %cst_11 = arith.constant dense<0.000000e+00> : vector<8x1024xf32>
    %18 = vector.multi_reduction <add>, %17, %cst_11 [0] : vector<1x8x1024xf32> to vector<8x1024xf32>
    %19 = arith.addf %16, %18 : vector<8x1024xf32>
    %c0_12 = arith.constant 0 : index
    %c0_13 = arith.constant 0 : index
    %c0_14 = arith.constant 0 : index
    %c0_15 = arith.constant 0 : index
    %20 = vector.load %arg5[%c0_12, %c0_13, %c0_14, %c0_15] : memref<1x4x8x1024xf32, #tpu.memory_space<vmem>>, vector<1x1x8x1024xf32>
    %21 = vector.shape_cast %20 : vector<1x1x8x1024xf32> to vector<8x1024xf32>
    %22 = vector.shape_cast %19 : vector<8x1024xf32> to vector<1x1x8x1024xf32>
    tpu.vector_store %arg5[%c0_12, %c0_13, %c0_14, %c0_15], %22 {strides = array<i32>} : memref<1x4x8x1024xf32, #tpu.memory_space<vmem>>, vector<1x1x8x1024xf32>,
    %c0_16 = arith.constant 0 : index
    %c1 = arith.constant 1 : index
    %c0_17 = arith.constant 0 : index
    %c0_18 = arith.constant 0 : index
    %23 = vector.load %arg5[%c0_16, %c1, %c0_17, %c0_18] : memref<1x4x8x1024xf32, #tpu.memory_space<vmem>>, vector<1x1x8x1024xf32>
    %24 = vector.shape_cast %23 : vector<1x1x8x1024xf32> to vector<8x1024xf32>
    %25 = arith.mulf %4, %5 : vector<8x1024xf32>
    %26 = vector.shape_cast %25 : vector<8x1024xf32> to vector<1x8x1024xf32>
    %cst_19 = arith.constant dense<0.000000e+00> : vector<8x1024xf32>
    %27 = vector.multi_reduction <add>, %26, %cst_19 [0] : vector<1x8x1024xf32> to vector<8x1024xf32>
    %28 = arith.addf %24, %27 : vector<8x1024xf32>
    %c0_20 = arith.constant 0 : index
    %c1_21 = arith.constant 1 : index
    %c0_22 = arith.constant 0 : index
    %c0_23 = arith.constant 0 : index
    %29 = vector.load %arg5[%c0_20, %c1_21, %c0_22, %c0_23] : memref<1x4x8x1024xf32, #tpu.memory_space<vmem>>, vector<1x1x8x1024xf32>
    %30 = vector.shape_cast %29 : vector<1x1x8x1024xf32> to vector<8x1024xf32>
    %31 = vector.shape_cast %28 : vector<8x1024xf32> to vector<1x1x8x1024xf32>
    tpu.vector_store %arg5[%c0_20, %c1_21, %c0_22, %c0_23], %31 {strides = array<i32>} : memref<1x4x8x1024xf32, #tpu.memory_space<vmem>>, vector<1x1x8x1024xf32>,
    %c0_24 = arith.constant 0 : index
    %c2 = arith.constant 2 : index
    %c0_25 = arith.constant 0 : index
    %c0_26 = arith.constant 0 : index
    %32 = vector.load %arg5[%c0_24, %c2, %c0_25, %c0_26] : memref<1x4x8x1024xf32, #tpu.memory_space<vmem>>, vector<1x1x8x1024xf32>
    %33 = vector.shape_cast %32 : vector<1x1x8x1024xf32> to vector<8x1024xf32>
    %34 = vector.shape_cast %14 : vector<8x1024xf32> to vector<1x8x1024xf32>
    %cst_27 = arith.constant dense<0.000000e+00> : vector<8x1024xf32>
    %35 = vector.multi_reduction <add>, %34, %cst_27 [0] : vector<1x8x1024xf32> to vector<8x1024xf32>
    %36 = arith.addf %33, %35 : vector<8x1024xf32>
    %c0_28 = arith.constant 0 : index
    %c2_29 = arith.constant 2 : index
    %c0_30 = arith.constant 0 : index
    %c0_31 = arith.constant 0 : index
    %37 = vector.load %arg5[%c0_28, %c2_29, %c0_30, %c0_31] : memref<1x4x8x1024xf32, #tpu.memory_space<vmem>>, vector<1x1x8x1024xf32>
    %38 = vector.shape_cast %37 : vector<1x1x8x1024xf32> to vector<8x1024xf32>
    %39 = vector.shape_cast %36 : vector<8x1024xf32> to vector<1x1x8x1024xf32>
    tpu.vector_store %arg5[%c0_28, %c2_29, %c0_30, %c0_31], %39 {strides = array<i32>} : memref<1x4x8x1024xf32, #tpu.memory_space<vmem>>, vector<1x1x8x1024xf32>,
    %c0_32 = arith.constant 0 : index
    %c3 = arith.constant 3 : index
    %c0_33 = arith.constant 0 : index
    %c0_34 = arith.constant 0 : index
    %40 = vector.load %arg5[%c0_32, %c3, %c0_33, %c0_34] : memref<1x4x8x1024xf32, #tpu.memory_space<vmem>>, vector<1x1x8x1024xf32>
    %41 = vector.shape_cast %40 : vector<1x1x8x1024xf32> to vector<8x1024xf32>
    %42 = arith.mulf %14, %4 : vector<8x1024xf32>
    %43 = vector.shape_cast %42 : vector<8x1024xf32> to vector<1x8x1024xf32>
    %cst_35 = arith.constant dense<0.000000e+00> : vector<8x1024xf32>
    %44 = vector.multi_reduction <add>, %43, %cst_35 [0] : vector<1x8x1024xf32> to vector<8x1024xf32>
    %45 = arith.addf %41, %44 : vector<8x1024xf32>
    %c0_36 = arith.constant 0 : index
    %c3_37 = arith.constant 3 : index
    %c0_38 = arith.constant 0 : index
    %c0_39 = arith.constant 0 : index
    %46 = vector.load %arg5[%c0_36, %c3_37, %c0_38, %c0_39] : memref<1x4x8x1024xf32, #tpu.memory_space<vmem>>, vector<1x1x8x1024xf32>
    %47 = vector.shape_cast %46 : vector<1x1x8x1024xf32> to vector<8x1024xf32>
    %48 = vector.shape_cast %45 : vector<8x1024xf32> to vector<1x1x8x1024xf32>
    tpu.vector_store %arg5[%c0_36, %c3_37, %c0_38, %c0_39], %48 {strides = array<i32>} : memref<1x4x8x1024xf32, #tpu.memory_space<vmem>>, vector<1x1x8x1024xf32>,
    return
  }
  func.func @transform_0(%arg0: i32, %arg1: i32) -> (i32, i32) {
    %c1_i32 = arith.constant 1 : i32
    %0 = arith.muli %arg0, %c1_i32 : i32
    %1 = arith.addi %0, %arg1 : i32
    %c0_i32 = arith.constant 0 : i32
    %2 = arith.minsi %1, %c0_i32 : i32
    %c0_i32_0 = arith.constant 0 : i32
    %c0_i32_1 = arith.constant 0 : i32
    return %2, %c0_i32_0 : i32, i32
  }
  func.func @transform_1(%arg0: i32, %arg1: i32) -> (i32, i32) {
    %c1_i32 = arith.constant 1 : i32
    %0 = arith.muli %arg0, %c1_i32 : i32
    %1 = arith.addi %0, %arg1 : i32
    %c0_i32 = arith.constant 0 : i32
    %2 = arith.minsi %1, %c0_i32 : i32
    %c0_i32_0 = arith.constant 0 : i32
    %c0_i32_1 = arith.constant 0 : i32
    return %2, %c0_i32_0 : i32, i32
  }
  func.func @transform_2(%arg0: i32, %arg1: i32) -> (i32, i32) {
    %c1_i32 = arith.constant 1 : i32
    %0 = arith.muli %arg0, %c1_i32 : i32
    %1 = arith.addi %0, %arg1 : i32
    %c0_i32 = arith.constant 0 : i32
    %2 = arith.minsi %1, %c0_i32 : i32
    %c0_i32_0 = arith.constant 0 : i32
    %c0_i32_1 = arith.constant 0 : i32
    return %2, %c0_i32_0 : i32, i32
  }
  func.func @transform_3(%arg0: i32, %arg1: i32) -> (i32, i32, i32, i32) {
    %c0_i32 = arith.constant 0 : i32
    %c0_i32_0 = arith.constant 0 : i32
    %c0_i32_1 = arith.constant 0 : i32
    %c0_i32_2 = arith.constant 0 : i32
    return %arg0, %c0_i32, %c0_i32_0, %c0_i32_1 : i32, i32, i32, i32
  }
}

</mosaic_0001>

<bundles_post_ra>
// kernel: cpn_loss.1
= control target key start
LH: loop header
LB: loop body
LE: loop exit
PB: predicated region body
PF: predicated region fallthrough
CT: control target
= control target key end

     0   :  { %s890_s2 = inlined_call_operand.vmem [shape: f32[8,1024], index: 2, kind: input, shape index: {}]   ;;  %s891_s1 = inlined_call_operand.vmem [shape: f32[8,1024], index: 1, kind: input, shape index: {}]   ;;  %s892_s3 = inlined_call_operand.vmem [shape: f32[1,4,8,1024], index: 3, kind: output, shape index: {}]   ;;  %s893_s0 = inlined_call_operand.vmem [shape: f32[8,1024], index: 0, kind: input, shape index: {}]  }
   0x1   :  { %v573_v0 = vld [vmem:[%s890_s2] sm:$0xff]  ;;  %v578_v1 = vld [vmem:[%s890_s2 + $0x8] sm:$0xff]  ;;  %v583_v2 = vld [vmem:[%s890_s2 + $0x10] sm:$0xff] }
   0x2   :  { %v588_v3 = vld [vmem:[%s890_s2 + $0x18] sm:$0xff]  ;;  %v593_v4 = vld [vmem:[%s890_s2 + $0x20] sm:$0xff]  ;;  %v598_v5 = vld [vmem:[%s890_s2 + $0x28] sm:$0xff]  ;;  %316 = vst [vmem:[%s892_s3] sm:$0xff] %v573_v0 }
   0x3   :  { %v603_v6 = vld [vmem:[%s890_s2 + $0x30] sm:$0xff]  ;;  %v608_v7 = vld [vmem:[%s890_s2 + $0x38] sm:$0xff]  ;;  %v613_v8 = vld [vmem:[%s891_s1] sm:$0xff]  ;;  %317 = vst [vmem:[%s892_s3 + $0x8] sm:$0xff] %v578_v1 }
   0x4   :  { %318 = vst [vmem:[%s892_s3 + $0x10] sm:$0xff] %v583_v2  ;;  %v333_v9 = vmul.f32 %v573_v0, %v613_v8  ;;  %v632_v10 = vld [vmem:[%s891_s1 + $0x8] sm:$0xff]  ;;  %v637_v11 = vld [vmem:[%s891_s1 + $0x10] sm:$0xff]  ;;  %v642_v12 = vld [vmem:[%s891_s1 + $0x18] sm:$0xff] }
   0x5   :  { %319 = vst [vmem:[%s892_s3 + $0x18] sm:$0xff] %v588_v3  ;;  %320 = vst [vmem:[%s892_s3 + $0x20] sm:$0xff] %v593_v4  ;;  %v334_v13 = vmul.f32 %v578_v1, %v632_v10  ;;  %v335_v14 = vmul.f32 %v583_v2, %v637_v11  ;;  %v336_v15 = vmul.f32 %v588_v3, %v642_v12  ;;  %v665_v16 = vld [vmem:[%s891_s1 + $0x20] sm:$0xff]  ;;  %v670_v17 = vld [vmem:[%s891_s1 + $0x28] sm:$0xff] }
   0x6   :  { %321 = vst [vmem:[%s892_s3 + $0x28] sm:$0xff] %v598_v5  ;;  %v675_v18 = vld [vmem:[%s891_s1 + $0x30] sm:$0xff]  ;;  %322 = vst [vmem:[%s892_s3 + $0x30] sm:$0xff] %v603_v6  ;;  %v337_v19 = vmul.f32 %v593_v4, %v665_v16  ;;  %v338_v20 = vmul.f32 %v598_v5, %v670_v17  ;;  %v694_v22 = vld [vmem:[%s891_s1 + $0x38] sm:$0xff] }
   0x7   :  { %323 = vst [vmem:[%s892_s3 + $0x38] sm:$0xff] %v608_v7  ;;  %v339_v21 = vmul.f32 %v603_v6, %v675_v18  ;;  %v140_v23 = vld [vmem:[%s893_s0] sm:$0xff]  ;;  %v141_v24 = vld [vmem:[%s893_s0 + $0x8] sm:$0xff]  ;;  %v340_v25 = vmul.f32 %v608_v7, %v694_v22  ;;  %v142_v26 = vld [vmem:[%s893_s0 + $0x10] sm:$0xff] }
   0x8   :  { %v143_v27 = vld [vmem:[%s893_s0 + $0x18] sm:$0xff]  ;;  %v144_v28 = vld [vmem:[%s893_s0 + $0x20] sm:$0xff]  ;;  %477 = vst [vmem:[%s892_s3 + $0x40] sm:$0xff] %v333_v9  ;;  %v461_v29 = vclamps-f32 %v140_v23, 6.906755  ;;  %v145_v30 = vld [vmem:[%s893_s0 + $0x28] sm:$0xff] }
   0x9   :  { %478 = vst [vmem:[%s892_s3 + $0x48] sm:$0xff] %v334_v13  ;;  %479 = vst [vmem:[%s892_s3 + $0x50] sm:$0xff] %v335_v14  ;;  %v462_v31 = vclamps-f32 %v141_v24, 6.906755  ;;  %v463_v32 = vclamps-f32 %v142_v26, 6.906755 }
   0xa   :  { %480 = vst [vmem:[%s892_s3 + $0x58] sm:$0xff] %v336_v15  ;;  %v464_v33 = vclamps-f32 %v143_v27, 6.906755  ;;  %481 = vst [vmem:[%s892_s3 + $0x60] sm:$0xff] %v337_v19  ;;  %v180_v34 = vmul.f32 1.442695, %v461_v29  ;;  %v747_v51 = vmul.f32 %v461_v29, %v613_v8 }
   0xb   :  { %482 = vst [vmem:[%s892_s3 + $0x68] sm:$0xff] %v338_v20  ;;  %483 = vst [vmem:[%s892_s3 + $0x70] sm:$0xff] %v339_v21  ;;  %v465_v35 = vclamps-f32 %v144_v28, 6.906755  ;;  %v466_v36 = vclamps-f32 %v145_v30, 6.906755  ;;  %v750_v56 = vmul.f32 %v462_v31, %v632_v10  ;;  %v753_v59 = vmul.f32 %v463_v32, %v637_v11 }
   0xc   :  { %484 = vst [vmem:[%s892_s3 + $0x78] sm:$0xff] %v340_v25  ;;  %v182_v37 = vmul.f32 1.442695, %v462_v31  ;;  %v184_v38 = vmul.f32 1.442695, %v463_v32  ;;  %v146_v39 = vld [vmem:[%s893_s0 + $0x30] sm:$0xff]  ;;  %518 = vpow2.f32 %v180_v34  ;;  %v756_v60 = vmul.f32 %v464_v33, %v642_v12 }
   0xd   :  { %v147_v40 = vld [vmem:[%s893_s0 + $0x38] sm:$0xff]  ;;  %v186_v41 = vmul.f32 1.442695, %v464_v33  ;;  %v188_v42 = vmul.f32 1.442695, %v465_v35  ;;  %v759_v14 = vmul.f32 %v465_v35, %v665_v16  ;;  %v762_v15 = vmul.f32 %v466_v36, %v670_v17 }
   0xe   :  { %520 = vpow2.f32 %v182_v37  ;;  %v190_v43 = vmul.f32 1.442695, %v466_v36  ;;  %v467_v44 = vclamps-f32 %v146_v39, 6.906755  ;;  %v468_v45 = vclamps-f32 %v147_v40, 6.906755 }
   0xf   :  { %522 = vpow2.f32 %v184_v38 }
  0x10   :  { %524 = vpow2.f32 %v186_v41  ;;  %v192_v46 = vmul.f32 1.442695, %v467_v44  ;;  %v194_v47 = vmul.f32 1.442695, %v468_v45  ;;  %v765_v23 = vmul.f32 %v467_v44, %v675_v18 }
  0x11   :  { %526 = vpow2.f32 %v188_v42  ;;  %v768_v24 = vmul.f32 %v468_v45, %v694_v22 }
  0x12   :  { %528 = vpow2.f32 %v190_v43 }
  0x13   :  { %530 = vpow2.f32 %v192_v46 }
  0x14   :  { %532 = vpow2.f32 %v194_v47 }
  0x16   :  { %v519_v48 = vpop.eup %518 }
  0x17   :  { %v196_v50 = vadd.f32 1.0, %v519_v48  ;;  %v199_v53 = vmul.f32 -0.5, %v519_v48  ;;  %v202_v62 = vand.u32 2147483647, %v519_v48 }
  0x18   :  { %v521_v49 = vpop.eup %520 }
  0x19   :  { %v523_v52 = vpop.eup %522  ;;  %v205_v54 = vadd.f32 1.0, %v521_v49  ;;  %v208_v55 = vmul.f32 -0.5, %v521_v49  ;;  %534 = vlog2.f32 %v196_v50  ;;  %v211_v63 = vand.u32 2147483647, %v521_v49 }
  0x1a   :  { %v525_v57 = vpop.eup %524  ;;  %v214_v58 = vadd.f32 1.0, %v523_v52  ;;  %v217_v9 = vmul.f32 -0.5, %v523_v52  ;;  %v200_v20 = vadd.f32 1.0, %v199_v53  ;;  %v220_v26 = vand.u32 2147483647, %v523_v52 }
  0x1b   :  { %v527_v61 = vpop.eup %526  ;;  %536 = vlog2.f32 %v205_v54  ;;  %v223_v13 = vadd.f32 1.0, %v525_v57  ;;  %v209_v21 = vadd.f32 1.0, %v208_v55  ;;  %v226_v27 = vmul.f32 -0.5, %v525_v57 }
  0x1c   :  { %538 = vlog2.f32 %v214_v58  ;;  %v529_v19 = vpop.eup %528  ;;  %v232_v28 = vadd.f32 1.0, %v527_v61  ;;  %vm770_vm0 = vcmp.lt.f32.partialorder %v202_v62, 0.0004427343  ;;  %vm774_vm1 = vcmp.lt.f32.partialorder %v211_v63, 0.0004427343 }
  0x1d   :  { %v531_v25 = vpop.eup %530  ;;  %540 = vlog2.f32 %v223_v13  ;;  %v218_v31 = vadd.f32 1.0, %v217_v9  ;;  %v235_v32 = vmul.f32 -0.5, %v527_v61  ;;  %v229_v34 = vand.u32 2147483647, %v525_v57 }
  0x1e   :  { %v533_v33 = vpop.eup %532  ;;  %542 = vlog2.f32 %v232_v28  ;;  %v241_v35 = vadd.f32 1.0, %v529_v19  ;;  %v244_v36 = vmul.f32 -0.5, %v529_v19  ;;  %v201_v37 = vmul.f32 %v519_v48, %v200_v20 }
  0x1f   :  { %v210_v38 = vmul.f32 %v521_v49, %v209_v21  ;;  %v238_v39 = vand.u32 2147483647, %v527_v61  ;;  %v250_v40 = vadd.f32 1.0, %v531_v25  ;;  %vm778_vm2 = vcmp.lt.f32.partialorder %v220_v26, 0.0004427343 }
  0x20   :  { %v227_v42 = vadd.f32 1.0, %v226_v27  ;;  %544 = vlog2.f32 %v241_v35  ;;  %v253_v43 = vmul.f32 -0.5, %v531_v25  ;;  %v219_v44 = vmul.f32 %v523_v52, %v218_v31 }
  0x21   :  { %v236_v45 = vadd.f32 1.0, %v235_v32  ;;  %546 = vlog2.f32 %v250_v40  ;;  %v259_v46 = vadd.f32 1.0, %v533_v33  ;;  %vm782_vm3 = vcmp.lt.f32.partialorder %v229_v34, 0.0004427343 }
  0x22   :  { %v245_v48 = vadd.f32 1.0, %v244_v36  ;;  %v247_v49 = vand.u32 2147483647, %v529_v19  ;;  %v262_v53 = vmul.f32 -0.5, %v533_v33  ;;  %vm786_vm4 = vcmp.lt.f32.partialorder %v238_v39, 0.0004427343 }
  0x23   :  { %v535_v47 = vpop.eup %534  ;;  %v256_v62 = vand.u32 2147483647, %v531_v25  ;;  %548 = vlog2.f32 %v259_v46  ;;  %v228_v9 = vmul.f32 %v525_v57, %v227_v42  ;;  %v254_v13 = vadd.f32 1.0, %v253_v43 }
  0x24   :  { %v198_v55 = vmul.f32 0.6931472, %v535_v47  ;;  %v265_v20 = vand.u32 2147483647, %v533_v33  ;;  %v237_v27 = vmul.f32 %v527_v61, %v236_v45  ;;  %v263_v28 = vadd.f32 1.0, %v262_v53 }
  0x25   :  { %v537_v54 = vpop.eup %536  ;;  %v246_v35 = vmul.f32 %v529_v19, %v245_v48  ;;  %vm795_vm5 = vcmp.lt.f32.partialorder %v247_v49, 0.0004427343  ;;  %vm802_vm6 = vcmp.lt.f32.partialorder %v256_v62, 0.0004427343  ;;  %v255_v19 = vmul.f32 %v531_v25, %v254_v13 }
  0x26   :  { %v539_v52 = vpop.eup %538  ;;  %v207_v63 = vmul.f32 0.6931472, %v537_v54  ;;  %v204_v21 = vsel %vm770_vm0, %v201_v37, %v198_v55  ;;  %vm808_vm7 = vcmp.lt.f32.partialorder %v265_v20, 0.0004427343  ;;  %v264_v42 = vmul.f32 %v533_v33, %v263_v28 }
  0x27   :  { %v216_v26 = vmul.f32 0.6931472, %v539_v52  ;;  %v541_v31 = vpop.eup %540  ;;  %v276_v32 = vsub.f32 %v204_v21, %v747_v51 }
  0x28   :  { %v213_v34 = vsel %vm774_vm1, %v210_v38, %v207_v63  ;;  %v225_v37 = vmul.f32 0.6931472, %v541_v31  ;;  %v543_v39 = vpop.eup %542 }
  0x29   :  { %v277_v57 = vsub.f32 %v213_v34, %v750_v56  ;;  %v222_v29 = vsel %vm778_vm2, %v219_v44, %v216_v26  ;;  %v284_v51 = vmul.f32 %v276_v32, %v573_v0  ;;  %v234_v41 = vmul.f32 0.6931472, %v543_v39 }
  0x2a   :  { %v278_v30 = vsub.f32 %v222_v29, %v753_v59  ;;  %v231_v40 = vsel %vm782_vm3, %v228_v9, %v225_v37  ;;  %v545_v43 = vpop.eup %544 }
  0x2b   :  { %v285_v56 = vmul.f32 %v277_v57, %v578_v1  ;;  %v279_v45 = vsub.f32 %v231_v40, %v756_v60  ;;  %v407_v0 = vmul.f32 %v284_v51, %v613_v8  ;;  %v547_v59 = vpop.eup %546  ;;  %v240_v25 = vsel %vm786_vm4, %v237_v27, %v234_v41  ;;  %493 = vst [vmem:[%s892_s3 + $0x80] sm:$0xff] %v284_v51 }
  0x2c   :  { %v286_v44 = vmul.f32 %v278_v30, %v583_v2  ;;  %v243_v46 = vmul.f32 0.6931472, %v545_v43  ;;  %v280_v33 = vsub.f32 %v240_v25, %v759_v14  ;;  %v252_v2 = vmul.f32 0.6931472, %v547_v59 }
  0x2d   :  { %v408_v47 = vmul.f32 %v285_v56, %v632_v10  ;;  %v287_v1 = vmul.f32 %v279_v45, %v588_v3  ;;  %v549_v50 = vpop.eup %548  ;;  %494 = vst [vmem:[%s892_s3 + $0x88] sm:$0xff] %v285_v56  ;;  %509 = vst [vmem:[%s892_s3 + $0xc0] sm:$0xff] %v407_v0 }
  0x2e   :  { %v249_v8 = vsel %vm795_vm5, %v246_v35, %v243_v46  ;;  %v409_v60 = vmul.f32 %v286_v44, %v637_v11  ;;  %495 = vst [vmem:[%s892_s3 + $0x90] sm:$0xff] %v286_v44  ;;  %v288_v10 = vmul.f32 %v280_v33, %v593_v4  ;;  %v258_v14 = vsel %vm802_vm6, %v255_v19, %v252_v2 }
  0x2f   :  { %v281_v3 = vsub.f32 %v249_v8, %v762_v15  ;;  %v282_v48 = vsub.f32 %v258_v14, %v765_v23  ;;  %v261_v49 = vmul.f32 0.6931472, %v549_v50  ;;  %510 = vst [vmem:[%s892_s3 + $0xc8] sm:$0xff] %v408_v47  ;;  %v410_v11 = vmul.f32 %v287_v1, %v642_v12  ;;  %496 = vst [vmem:[%s892_s3 + $0x98] sm:$0xff] %v287_v1 }
  0x30   :  { %v411_v15 = vmul.f32 %v288_v10, %v665_v16  ;;  %511 = vst [vmem:[%s892_s3 + $0xd0] sm:$0xff] %v409_v60  ;;  %497 = vst [vmem:[%s892_s3 + $0xa0] sm:$0xff] %v288_v10 }
  0x31   :  { %v289_v4 = vmul.f32 %v281_v3, %v598_v5  ;;  %v290_v23 = vmul.f32 %v282_v48, %v603_v6  ;;  %v267_v53 = vsel %vm808_vm7, %v264_v42, %v261_v49  ;;  %512 = vst [vmem:[%s892_s3 + $0xd8] sm:$0xff] %v410_v11 }
  0x32   :  { %v283_v12 = vsub.f32 %v267_v53, %v768_v24  ;;  %513 = vst [vmem:[%s892_s3 + $0xe0] sm:$0xff] %v411_v15 }
  0x33   :  { %v412_v54 = vmul.f32 %v289_v4, %v670_v17  ;;  %v413_v5 = vmul.f32 %v290_v23, %v675_v18  ;;  %498 = vst [vmem:[%s892_s3 + $0xa8] sm:$0xff] %v289_v4  ;;  %499 = vst [vmem:[%s892_s3 + $0xb0] sm:$0xff] %v290_v23 }
  0x34   :  { %v291_v6 = vmul.f32 %v283_v12, %v608_v7 }
  0x35   :  { %514 = vst [vmem:[%s892_s3 + $0xe8] sm:$0xff] %v412_v54  ;;  %515 = vst [vmem:[%s892_s3 + $0xf0] sm:$0xff] %v413_v5 }
  0x36   :  { %v414_v16 = vmul.f32 %v291_v6, %v694_v22  ;;  %500 = vst [vmem:[%s892_s3 + $0xb8] sm:$0xff] %v291_v6 }
  0x38   :  { %516 = vst [vmem:[%s892_s3 + $0xf8] sm:$0xff] %v414_v16 }

</bundles_post_ra>
